<compile_context>
chip_gen: v7x
topology: tpu7x:2x2x1
jax: 0.10.0
libtpu: 0.0.40
codegen_flags: <defaults>
</compile_context>

<pallas_src>
import functools

import jax
import jax.numpy as jnp
from jax.experimental import pallas as pl
from jax.experimental.pallas import tpu as pltpu

N_EMBD = 64
HIDDEN = 4 * N_EMBD  # 256


def _cdiv(a, b):
    return -(-a // b)


def _round_up(x, m):
    return _cdiv(x, m) * m


def _block_diag2(w):
    """[[w, 0], [0, w]] -- lets two packed rows share one lane-dense matmul."""
    i, o = w.shape
    z = jnp.zeros((i, o), w.dtype)
    top = jnp.concatenate([w, z], axis=1)
    bot = jnp.concatenate([z, w], axis=1)
    return jnp.concatenate([top, bot], axis=0)


def _ffwd_kernel(x_ref, w1_ref, b1_ref, w2_ref, b2_ref, o_ref):
    # x_ref : (bm2, 2C)  packed pairs of rows (lane-dense, input dtype)
    # w1_ref: (2C, 2H) bf16 block-diag, b1_ref: (1, 2H) f32
    # w2_ref: (2H, 2C) bf16 block-diag, b2_ref: (1, 2C) f32
    # o_ref : (bm2, 2C)  packed pairs of rows (input dtype)
    x = x_ref[...].astype(jnp.bfloat16)  # no-op if activations already bf16
    h = jnp.dot(x, w1_ref[...], preferred_element_type=jnp.float32) + b1_ref[...]
    h = jnp.maximum(h, 0.0)  # ReLU
    y = jnp.dot(h.astype(jnp.bfloat16), w2_ref[...],
                preferred_element_type=jnp.float32) + b2_ref[...]
    # TODO(synk): fuse residual add / downstream cast / training-mode dropout here
    #             (VPU & EUP slots have slack), before the single store.
    o_ref[...] = y.astype(o_ref.dtype)


@functools.partial(jax.jit, static_argnames=("block_m",))
def feedforward(x, w1, b1, w2, b2, *, block_m=4096):
    """x: (B, T, C).  w1: (C, 4C), b1: (4C,), w2: (4C, C), b2: (C,).

    Returns (B, T, C) in x.dtype.  Eval-mode dropout (identity).
    """
    B, T, C = x.shape
    H = w1.shape[1]
    M = B * T

    # Pack two consecutive rows into one 128-lane row: (M, C) -> (Mp2, 2C).
    M_even = M + (M % 2)          # pad at most one row (only if B*T is odd)
    Mp2 = M_even // 2

    # Packed-row block granularity: 8 sublanes for f32, 16 for bf16 (sublane packing).
    gran2 = 16 if jnp.dtype(x.dtype) == jnp.dtype(jnp.bfloat16) else 8
    bm2_cap = max(gran2, (min(block_m, 8192) // 2 // gran2) * gran2)
    if bm2_cap >= Mp2:
        # Single block covering the whole (small) problem; block == full array dims.
        bm2, grid_n = Mp2, 1
    else:
        # Prefer an even number of row blocks so v7x's two TensorCores get
        # balanced work under dimension_semantics=("parallel",).
        n_blocks = _cdiv(Mp2, bm2_cap)
        if n_blocks % 2:
            n_blocks += 1
        bm2 = _round_up(_cdiv(Mp2, n_blocks), gran2)
        grid_n = _cdiv(Mp2, bm2)

    x2 = x.reshape(M, C)
    if M_even != M:
        x2 = jnp.pad(x2, ((0, 1), (0, 0)))   # single-row pad; rare (odd B*T)
    x2 = x2.reshape(Mp2, 2 * C)

    # Block-diagonal bf16 weights (~0.25 MiB total) and f32 biases; resident.
    w1b = _block_diag2(w1.astype(jnp.bfloat16))                      # (2C, 2H)
    w2b = _block_diag2(w2.astype(jnp.bfloat16))                      # (2H, 2C)
    b1b = jnp.concatenate([b1, b1]).astype(jnp.float32).reshape(1, 2 * H)
    b2b = jnp.concatenate([b2, b2]).astype(jnp.float32).reshape(1, 2 * C)

    itemsize = jnp.dtype(x.dtype).itemsize
    flops = 2 * 2 * Mp2 * (2 * C) * (2 * H)          # two block-diag matmuls
    bytes_accessed = (2 * Mp2 * 2 * C * itemsize     # x in + y out
                      + w1b.size * 2 + w2b.size * 2
                      + b1b.size * 4 + b2b.size * 4)

    out2 = pl.pallas_call(
        _ffwd_kernel,
        out_shape=jax.ShapeDtypeStruct((Mp2, 2 * C), x.dtype),
        grid=(grid_n,),
        in_specs=[
            pl.BlockSpec((bm2, 2 * C), lambda i: (i, 0)),     # packed x tile
            pl.BlockSpec((2 * C, 2 * H), lambda i: (0, 0)),   # W1 block-diag (resident)
            pl.BlockSpec((1, 2 * H), lambda i: (0, 0)),       # b1
            pl.BlockSpec((2 * H, 2 * C), lambda i: (0, 0)),   # W2 block-diag (resident)
            pl.BlockSpec((1, 2 * C), lambda i: (0, 0)),       # b2
        ],
        out_specs=pl.BlockSpec((bm2, 2 * C), lambda i: (i, 0)),
        compiler_params=pltpu.CompilerParams(
            dimension_semantics=("parallel",),
            # 32 MiB: matches v6e/v7x default, raises v5e's 16 MiB default so the
            # bigger default tile (bm=4096 -> ~12 MiB resident) fits everywhere,
            # and leaves headroom on v7x's 64 MiB physical VMEM.
            vmem_limit_bytes=32 * 1024 * 1024,
        ),
        cost_estimate=pl.CostEstimate(
            flops=flops, transcendentals=0, bytes_accessed=bytes_accessed),
    )(x2, w1b, b1b, w2b, b2b)

    out = out2.reshape(M_even, C)
    if M_even != M:
        out = out[:M]
    return out.reshape(B, T, C)


def _init_params(key, n_embd=N_EMBD):
    """Deterministic init mimicking PyTorch nn.Linear default (U(-1/sqrt(fan_in), +))."""
    h = 4 * n_embd
    k1, k2, k3, k4 = jax.random.split(key, 4)
    bound1 = 1.0 / (n_embd ** 0.5)
    bound2 = 1.0 / (h ** 0.5)
    # stored as (in, out) so forward is x @ W + b  (== PyTorch's x @ W.T + b)
    w1 = jax.random.uniform(k1, (n_embd, h), jnp.float32, -bound1, bound1)
    b1 = jax.random.uniform(k2, (h,), jnp.float32, -bound1, bound1)
    w2 = jax.random.uniform(k3, (h, n_embd), jnp.float32, -bound2, bound2)
    b2 = jax.random.uniform(k4, (n_embd,), jnp.float32, -bound2, bound2)
    return w1, b1, w2, b2


def _ref_bf16(x, w1, b1, w2, b2):
    """Reference with the same cast points as the kernel (bf16 operands, f32 accum)."""
    B, T, C = x.shape
    x2 = x.reshape(-1, C).astype(jnp.bfloat16)
    h = jnp.dot(x2, w1.astype(jnp.bfloat16), preferred_element_type=jnp.float32) + b1
    h = jnp.maximum(h, 0.0)
    y = jnp.dot(h.astype(jnp.bfloat16), w2.astype(jnp.bfloat16),
                preferred_element_type=jnp.float32) + b2
    return y.reshape(B, T, C)


def _ref_f32(x, w1, b1, w2, b2):
    B, T, C = x.shape
    y = jnp.maximum(x.reshape(-1, C) @ w1 + b1, 0.0) @ w2 + b2
    return y.reshape(B, T, C)


if __name__ == "__main__":
    key = jax.random.PRNGKey(0)
    k_x, k_p, k_x2, k_x3 = jax.random.split(key, 4)

    w1, b1, w2, b2 = _init_params(k_p)

    # (1) Small shape consistent with the module: batch=2, seq=8, n_embd=64.
    B, T, C = 2, 8, N_EMBD
    x = jax.random.normal(k_x, (B, T, C), jnp.float32)
    out = jax.block_until_ready(feedforward(x, w1, b1, w2, b2))
    assert out.shape == (B, T, C) and out.dtype == x.dtype
    assert jnp.allclose(out, _ref_bf16(x, w1, b1, w2, b2), atol=2e-3, rtol=2e-3), \
        "mismatch vs bf16 reference"
    assert jnp.allclose(out, _ref_f32(x, w1, b1, w2, b2), atol=6e-2, rtol=6e-2), \
        "mismatch vs f32 reference (eval-mode dropout == identity)"

    # (2) Odd B*T: exercises the one-row even-pad + exact-size output path.
    Br, Tr = 3, 7
    xr = jax.random.normal(k_x2, (Br, Tr, C), jnp.float32)
    outr = jax.block_until_ready(feedforward(xr, w1, b1, w2, b2))
    assert outr.shape == (Br, Tr, C)
    assert jnp.allclose(outr, _ref_bf16(xr, w1, b1, w2, b2), atol=2e-3, rtol=2e-3), \
        "odd-M mismatch vs bf16 reference"

    # (3) Multi-block grid with a partial (OOB-masked) edge block and an even
    #     step count (v7x two-TensorCore split): B*T=400, block_m=128.
    Bm, Tm = 4, 100
    xm = jax.random.normal(k_x3, (Bm, Tm, C), jnp.float32)
    outm = jax.block_until_ready(feedforward(xm, w1, b1, w2, b2, block_m=128))
    assert outm.shape == (Bm, Tm, C)
    assert jnp.allclose(outm, _ref_bf16(xm, w1, b1, w2, b2), atol=2e-3, rtol=2e-3), \
        "multi-block / partial-edge mismatch vs bf16 reference"

    # (4) bf16 activations: bf16 in, bf16 out (halved HBM traffic path).
    xb = x.astype(jnp.bfloat16)
    outb = jax.block_until_ready(feedforward(xb, w1, b1, w2, b2))
    assert outb.dtype == jnp.bfloat16
    assert jnp.allclose(outb.astype(jnp.float32), _ref_bf16(xb, w1, b1, w2, b2),
                        atol=3e-2, rtol=3e-2), "bf16-I/O mismatch vs bf16 reference"

    print("KERNEL_OK")
</pallas_src>

<mosaic_0001>
module attributes {stable_mosaic.version = 11 : i64} {
  func.func @_ffwd_kernel(%arg0: i32, %arg1: memref<8x128xf32, #tpu.memory_space<vmem>>, %arg2: memref<128x512xbf16, #tpu.memory_space<vmem>>, %arg3: memref<1x512xf32, #tpu.memory_space<vmem>>, %arg4: memref<512x128xbf16, #tpu.memory_space<vmem>>, %arg5: memref<1x128xf32, #tpu.memory_space<vmem>>, %arg6: memref<8x128xf32, #tpu.memory_space<vmem>>) attributes {dimension_semantics = [#tpu.dimension_semantics<parallel>], iteration_bounds = array<i64: 1>, scalar_prefetch = 0 : i64, scratch_operands = 0 : i64, tpu.core_type = #tpu.core_type<tc>, window_params = [{transform_indices = @transform_0, window_bounds = array<i64: 8, 128>}, {pipeline_mode = #tpu.pipeline_mode<synchronous>, transform_indices = @transform_1, window_bounds = array<i64: 128, 512>}, {pipeline_mode = #tpu.pipeline_mode<synchronous>, transform_indices = @transform_2, window_bounds = array<i64: 1, 512>}, {pipeline_mode = #tpu.pipeline_mode<synchronous>, transform_indices = @transform_3, window_bounds = array<i64: 512, 128>}, {pipeline_mode = #tpu.pipeline_mode<synchronous>, transform_indices = @transform_4, window_bounds = array<i64: 1, 128>}, {transform_indices = @transform_5, window_bounds = array<i64: 8, 128>}]} {
    %c0 = arith.constant 0 : index
    %c0_0 = arith.constant 0 : index
    %0 = vector.load %arg1[%c0, %c0_0] : memref<8x128xf32, #tpu.memory_space<vmem>>, vector<8x128xf32>
    %1 = arith.truncf %0 : vector<8x128xf32> to vector<8x128xbf16>
    %c0_1 = arith.constant 0 : index
    %c0_2 = arith.constant 0 : index
    %2 = vector.load %arg2[%c0_1, %c0_2] : memref<128x512xbf16, #tpu.memory_space<vmem>>, vector<128x512xbf16>
    %cst = arith.constant dense<0.000000e+00> : vector<8x512xf32>
    %3 = tpu.matmul %1, %2, %cst {dimension_numbers = #tpu.dot_dimension_numbers<[1], [0], [0], [1], [0, 0, 1, 1], [], []>} : vector<8x128xbf16>, vector<128x512xbf16>, vector<8x512xf32> -> vector<8x512xf32>
    %c0_3 = arith.constant 0 : index
    %c0_4 = arith.constant 0 : index
    %4 = vector.load %arg3[%c0_3, %c0_4] : memref<1x512xf32, #tpu.memory_space<vmem>>, vector<1x512xf32>
    %5 = vector.broadcast %4 : vector<1x512xf32> to vector<8x512xf32>
    %6 = arith.addf %3, %5 : vector<8x512xf32>
    %cst_5 = arith.constant 0.000000e+00 : f32
    %7 = vector.broadcast %cst_5 : f32 to vector<8x512xf32>
    %8 = arith.maximumf %6, %7 : vector<8x512xf32>
    %9 = arith.truncf %8 : vector<8x512xf32> to vector<8x512xbf16>
    %c0_6 = arith.constant 0 : index
    %c0_7 = arith.constant 0 : index
    %10 = vector.load %arg4[%c0_6, %c0_7] : memref<512x128xbf16, #tpu.memory_space<vmem>>, vector<512x128xbf16>
    %cst_8 = arith.constant dense<0.000000e+00> : vector<8x128xf32>
    %11 = tpu.matmul %9, %10, %cst_8 {dimension_numbers = #tpu.dot_dimension_numbers<[1], [0], [0], [1], [0, 0, 1, 1], [], []>} : vector<8x512xbf16>, vector<512x128xbf16>, vector<8x128xf32> -> vector<8x128xf32>
    %c0_9 = arith.constant 0 : index
    %c0_10 = arith.constant 0 : index
    %12 = vector.load %arg5[%c0_9, %c0_10] : memref<1x128xf32, #tpu.memory_space<vmem>>, vector<1x128xf32>
    %13 = vector.broadcast %12 : vector<1x128xf32> to vector<8x128xf32>
    %14 = arith.addf %11, %13 : vector<8x128xf32>
    %c0_11 = arith.constant 0 : index
    %c0_12 = arith.constant 0 : index
    %15 = vector.load %arg6[%c0_11, %c0_12] : memref<8x128xf32, #tpu.memory_space<vmem>>, vector<8x128xf32>
    tpu.vector_store %arg6[%c0_11, %c0_12], %14 {strides = array<i32>} : memref<8x128xf32, #tpu.memory_space<vmem>>, vector<8x128xf32>,
    return
  }
  func.func @transform_0(%arg0: i32) -> (i32, i32) {
    %c0_i32 = arith.constant 0 : i32
    %c0_i32_0 = arith.constant 0 : i32
    return %arg0, %c0_i32 : i32, i32
  }
  func.func @transform_1(%arg0: i32) -> (i32, i32) {
    %c0_i32 = arith.constant 0 : i32
    %c0_i32_0 = arith.constant 0 : i32
    %c0_i32_1 = arith.constant 0 : i32
    return %c0_i32, %c0_i32_0 : i32, i32
  }
  func.func @transform_2(%arg0: i32) -> (i32, i32) {
    %c0_i32 = arith.constant 0 : i32
    %c0_i32_0 = arith.constant 0 : i32
    %c0_i32_1 = arith.constant 0 : i32
    return %c0_i32, %c0_i32_0 : i32, i32
  }
  func.func @transform_3(%arg0: i32) -> (i32, i32) {
    %c0_i32 = arith.constant 0 : i32
    %c0_i32_0 = arith.constant 0 : i32
    %c0_i32_1 = arith.constant 0 : i32
    return %c0_i32, %c0_i32_0 : i32, i32
  }
  func.func @transform_4(%arg0: i32) -> (i32, i32) {
    %c0_i32 = arith.constant 0 : i32
    %c0_i32_0 = arith.constant 0 : i32
    %c0_i32_1 = arith.constant 0 : i32
    return %c0_i32, %c0_i32_0 : i32, i32
  }
  func.func @transform_5(%arg0: i32) -> (i32, i32) {
    %c0_i32 = arith.constant 0 : i32
    %c0_i32_0 = arith.constant 0 : i32
    return %arg0, %c0_i32 : i32, i32
  }
}

</mosaic_0001>

<bundles_post_ra>
// kernel: feedforward.1
= control target key start
LH: loop header
LB: loop body
LE: loop exit
PB: predicated region body
PF: predicated region fallthrough
CT: control target
= control target key end

     0   :  { %v865_v1 = vmov 0   ;;  %s1100_s1 = inlined_call_operand.vmem [shape: bf16[128,512], index: 1, kind: input, shape index: {}]   ;;  %s1101_s3 = inlined_call_operand.vmem [shape: bf16[512,128], index: 3, kind: input, shape index: {}]   ;;  %s1102_s0 = inlined_call_operand.vmem [shape: f32[8,128], index: 0, kind: input, shape index: {}]   ;;  %s1103_s2 = inlined_call_operand.vmem [shape: f32[1,512], index: 2, kind: input, shape index: {}]   ;;  %s1104_s4 = inlined_call_operand.vmem [shape: f32[1,128], index: 4, kind: input, shape index: {}]   ;;  %s1105_s5 = inlined_call_operand.vmem [shape: f32[8,128], index: 5, kind: output, shape index: {}]  }
   0x1   :  { %v785_v0 = vld [vmem:[%s1100_s1 + $0x4] ss:$16 sps:$4 sm:$0xff]   ;;  %269 = vmatprep.mubr.bf16.mxu0 %v865_v1  ;;  %310 = vmatprep.mubr.bf16.mxu1 %v865_v1  ;;  %v787_v2 = vld [vmem:[%s1100_s1 + $0xc] ss:$16 sps:$4 sm:$0xff]   ;;  %v789_v3 = vld [vmem:[%s1100_s1] ss:$16 sps:$4 sm:$0xff]  }
   0x2   :  { %237 = vmatprep.subr.bf16.mxu0 %v785_v0  ;;  %v790_v4 = vld [vmem:[%s1100_s1 + $0x8] ss:$16 sps:$4 sm:$0xff]   ;;  %278 = vmatprep.subr.bf16.mxu1 %v787_v2  ;;  %v791_v5 = vld [vmem:[%s1100_s1 + $0x24] ss:$16 sps:$4 sm:$0xff]   ;;  %v793_v6 = vld [vmem:[%s1100_s1 + $0x2c] ss:$16 sps:$4 sm:$0xff]  }
   0x3   :  { %238 = vmatpush1.bf16.msra.mxu0 %v789_v3  ;;  %279 = vmatpush1.bf16.msra.mxu1 %v790_v4  ;;  %v795_v7 = vld [vmem:[%s1100_s1 + $0x20] ss:$16 sps:$4 sm:$0xff]   ;;  %v796_v8 = vld [vmem:[%s1100_s1 + $0x28] ss:$16 sps:$4 sm:$0xff]   ;;  %v797_v9 = vld [vmem:[%s1100_s1 + $0x44] ss:$16 sps:$4 sm:$0xff]   ;;  %v57_v3 = vlaneseq }
   0x4   :  { %239 = vmatprep.subr.bf16.mxu0 %v791_v5  ;;  %280 = vmatprep.subr.bf16.mxu1 %v793_v6  ;;  %v799_v10 = vld [vmem:[%s1100_s1 + $0x4c] ss:$16 sps:$4 sm:$0xff]   ;;  %v801_v11 = vld [vmem:[%s1100_s1 + $0x40] ss:$16 sps:$4 sm:$0xff]   ;;  %v802_v12 = vld [vmem:[%s1100_s1 + $0x48] ss:$16 sps:$4 sm:$0xff]  }
   0x5   :  { %v803_v13 = vld [vmem:[%s1100_s1 + $0x64] ss:$16 sps:$4 sm:$0xff]   ;;  %v805_v14 = vld [vmem:[%s1100_s1 + $0x6c] ss:$16 sps:$4 sm:$0xff]   ;;  %v807_v15 = vld [vmem:[%s1100_s1 + $0x60] ss:$16 sps:$4 sm:$0xff]  }
   0x6   :  { %v808_v16 = vld [vmem:[%s1100_s1 + $0x68] ss:$16 sps:$4 sm:$0xff]   ;;  %v809_v17 = vld [vmem:[%s1100_s1 + $0x84] ss:$16 sps:$4 sm:$0xff]   ;;  %v811_v18 = vld [vmem:[%s1100_s1 + $0x8c] ss:$16 sps:$4 sm:$0xff]  }
   0x7   :  { %240 = vmatpush1.bf16.msra.mxu0 %v795_v7  ;;  %281 = vmatpush1.bf16.msra.mxu1 %v796_v8  ;;  %v813_v19 = vld [vmem:[%s1100_s1 + $0x80] ss:$16 sps:$4 sm:$0xff]   ;;  %v814_v20 = vld [vmem:[%s1100_s1 + $0x88] ss:$16 sps:$4 sm:$0xff]   ;;  %v815_v21 = vld [vmem:[%s1100_s1 + $0xa4] ss:$16 sps:$4 sm:$0xff]  }
   0x8   :  { %241 = vmatprep.subr.bf16.mxu0 %v797_v9  ;;  %282 = vmatprep.subr.bf16.mxu1 %v799_v10  ;;  %v817_v22 = vld [vmem:[%s1100_s1 + $0xac] ss:$16 sps:$4 sm:$0xff]   ;;  %v819_v23 = vld [vmem:[%s1100_s1 + $0xa0] ss:$16 sps:$4 sm:$0xff]   ;;  %v820_v24 = vld [vmem:[%s1100_s1 + $0xa8] ss:$16 sps:$4 sm:$0xff]  }
   0x9   :  { %v821_v25 = vld [vmem:[%s1100_s1 + $0xc4] ss:$16 sps:$4 sm:$0xff]   ;;  %v823_v26 = vld [vmem:[%s1100_s1 + $0xcc] ss:$16 sps:$4 sm:$0xff]   ;;  %v825_v27 = vld [vmem:[%s1100_s1 + $0xc0] ss:$16 sps:$4 sm:$0xff]  }
   0xa   :  { %v826_v28 = vld [vmem:[%s1100_s1 + $0xc8] ss:$16 sps:$4 sm:$0xff]   ;;  %v827_v29 = vld [vmem:[%s1100_s1 + $0xe4] ss:$16 sps:$4 sm:$0xff]   ;;  %v829_v30 = vld [vmem:[%s1100_s1 + $0xec] ss:$16 sps:$4 sm:$0xff]  }
   0xb   :  { %242 = vmatpush1.bf16.msra.mxu0 %v801_v11  ;;  %283 = vmatpush1.bf16.msra.mxu1 %v802_v12  ;;  %v831_v31 = vld [vmem:[%s1100_s1 + $0xe0] ss:$16 sps:$4 sm:$0xff]   ;;  %v832_v32 = vld [vmem:[%s1100_s1 + $0xe8] ss:$16 sps:$4 sm:$0xff]   ;;  %v58_v4 = vshrl.u32 %v57_v3, 7 }
   0xc   :  { %243 = vmatprep.subr.bf16.mxu0 %v803_v13  ;;  %284 = vmatprep.subr.bf16.mxu1 %v805_v14  ;;  %v21_v33 = vld [vmem:[%s1102_s0] sm:$0xff]  ;;  %v837_v39 = vld [vmem:[%s1101_s3 + $0x48] sm:$0xff]   ;;  %v841_v43 = vld [vmem:[%s1101_s3 + $0x50] sm:$0xff]  }
   0xd   :  { %v833_v34 = vld [vmem:[%s1101_s3 + $0x40] sm:$0xff]   ;;  %v22_v37 = vpack.c.bf16 %v21_v33, %v21_v33  ;;  %v838_v40 = vld [vmem:[%s1101_s3 + $0xc8] sm:$0xff]   ;;  %v842_v44 = vld [vmem:[%s1101_s3 + $0xd0] sm:$0xff]   ;;  %v59_v5 = vsub.s32 0, %v58_v4  ;;  %v67_v6 = vsub.s32 2, %v58_v4  ;;  %v63_v8 = vsub.s32 1, %v58_v4 }
   0xe   :  { %v834_v35 = vld [vmem:[%s1101_s3 + $0xc0] sm:$0xff]   ;;  %v839_v41 = vld [vmem:[%s1101_s3 + $0x8] sm:$0xff]   ;;  %v843_v45 = vld [vmem:[%s1101_s3 + $0x10] sm:$0xff]   ;;  %v71_v9 = vsub.s32 3, %v58_v4 }
   0xf   :  { %244 = vmatpush1.bf16.msra.mxu0 %v807_v15  ;;  %285 = vmatpush1.bf16.msra.mxu1 %v808_v16  ;;  %v835_v36 = vld [vmem:[%s1101_s3] sm:$0xff]   ;;  %v840_v42 = vld [vmem:[%s1101_s3 + $0x88] sm:$0xff]   ;;  %v844_v46 = vld [vmem:[%s1101_s3 + $0x90] sm:$0xff]  }
  0x10   :  { %245 = vmatprep.subr.bf16.mxu0 %v809_v17  ;;  %286 = vmatprep.subr.bf16.mxu1 %v811_v18  ;;  %v836_v38 = vld [vmem:[%s1101_s3 + $0x80] sm:$0xff]   ;;  %v845_v47 = vld [vmem:[%s1101_s3 + $0x58] sm:$0xff]   ;;  %v853_v55 = vld [vmem:[%s1101_s3 + $0x68] sm:$0xff]  }
  0x11   :  { %v846_v48 = vld [vmem:[%s1101_s3 + $0xd8] sm:$0xff]   ;;  %v849_v51 = vld [vmem:[%s1101_s3 + $0x60] sm:$0xff]   ;;  %v854_v56 = vld [vmem:[%s1101_s3 + $0xe8] sm:$0xff]  }
  0x12   :  { %v847_v49 = vld [vmem:[%s1101_s3 + $0x18] sm:$0xff]   ;;  %v850_v52 = vld [vmem:[%s1101_s3 + $0xe0] sm:$0xff]   ;;  %v855_v57 = vld [vmem:[%s1101_s3 + $0x28] sm:$0xff]  }
  0x13   :  { %246 = vmatpush1.bf16.msra.mxu0 %v813_v19  ;;  %287 = vmatpush1.bf16.msra.mxu1 %v814_v20  ;;  %v848_v50 = vld [vmem:[%s1101_s3 + $0x98] sm:$0xff]   ;;  %v851_v53 = vld [vmem:[%s1101_s3 + $0x20] sm:$0xff]   ;;  %v856_v58 = vld [vmem:[%s1101_s3 + $0xa8] sm:$0xff]  }
  0x14   :  { %247 = vmatprep.subr.bf16.mxu0 %v815_v21  ;;  %288 = vmatprep.subr.bf16.mxu1 %v817_v22  ;;  %v852_v54 = vld [vmem:[%s1101_s3 + $0xa0] sm:$0xff]   ;;  %v857_v59 = vld [vmem:[%s1101_s3 + $0x70] sm:$0xff]   ;;  %v861_v63 = vld [vmem:[%s1101_s3 + $0x78] sm:$0xff]  }
  0x15   :  { %v858_v60 = vld [vmem:[%s1101_s3 + $0xf0] sm:$0xff]   ;;  %v862_v0 = vld [vmem:[%s1101_s3 + $0xf8] sm:$0xff]   ;;  %v55_v7 = vld [vmem:[%s1103_s2] sm:$0xf] }
  0x16   :  { %v859_v61 = vld [vmem:[%s1101_s3 + $0x30] sm:$0xff]   ;;  %v863_v1 = vld [vmem:[%s1101_s3 + $0x38] sm:$0xff]   ;;  %v60_v10 = vrot.slane %v55_v7, %v59_v5  ;;  %v68_v11 = vrot.slane %v55_v7, %v67_v6  ;;  %v64_v12 = vrot.slane %v55_v7, %v63_v8  ;;  %v72_v13 = vrot.slane %v55_v7, %v71_v9 }
  0x17   :  { %248 = vmatpush1.bf16.msra.mxu0 %v819_v23  ;;  %289 = vmatpush1.bf16.msra.mxu1 %v820_v24  ;;  %v860_v62 = vld [vmem:[%s1101_s3 + $0xb0] sm:$0xff]   ;;  %v864_v2 = vld [vmem:[%s1101_s3 + $0xb8] sm:$0xff]  }
  0x18   :  { %249 = vmatprep.subr.bf16.mxu0 %v821_v25  ;;  %290 = vmatprep.subr.bf16.mxu1 %v823_v26 }
  0x1b   :  { %250 = vmatpush1.bf16.msra.mxu0 %v825_v27  ;;  %291 = vmatpush1.bf16.msra.mxu1 %v826_v28 }
  0x1c   :  { %251 = vmatprep.subr.bf16.mxu0 %v827_v29  ;;  %292 = vmatprep.subr.bf16.mxu1 %v829_v30 }
  0x1f   :  { %252 = vmatpush1.bf16.msra.mxu0 %v831_v31  ;;  %293 = vmatpush1.bf16.msra.mxu1 %v832_v32 }
  0x20   :  { %740 = vmatprep.subr.bf16.mxu0 %v833_v34  ;;  %762 = vmatprep.subr.bf16.mxu1 %v834_v35 }
  0x22   :  { %270 = vmatmul.mubr.bf16.vlgmr.msra.gmra.mrb[0].mxu0 %v22_v37  ;;  %311 = vmatmul.mubr.bf16.vlgmr.msra.gmra.mrb[0].mxu1 %v22_v37 }
  0x23   :  { %741 = vmatpush3.bf16.msra.mxu0 %v835_v36  ;;  %763 = vmatpush3.bf16.msra.mxu1 %v836_v38  ;;  %v707_v36 = vld [vmem:[%s1104_s4] ss:$0 sm:$0xff] }
  0x24   :  { %742 = vmatprep.subr.bf16.mxu0 %v837_v39  ;;  %764 = vmatprep.subr.bf16.mxu1 %v838_v40 }
  0x27   :  { %743 = vmatpush3.bf16.msra.mxu0 %v839_v41  ;;  %765 = vmatpush3.bf16.msra.mxu1 %v840_v42 }
  0x28   :  { %744 = vmatprep.subr.bf16.mxu0 %v841_v43  ;;  %766 = vmatprep.subr.bf16.mxu1 %v842_v44 }
  0x2b   :  { %745 = vmatpush3.bf16.msra.mxu0 %v843_v45  ;;  %767 = vmatpush3.bf16.msra.mxu1 %v844_v46 }
  0x2c   :  { %746 = vmatprep.subr.bf16.mxu0 %v845_v47  ;;  %768 = vmatprep.subr.bf16.mxu1 %v846_v48 }
  0x2f   :  { %747 = vmatpush3.bf16.msra.mxu0 %v847_v49  ;;  %769 = vmatpush3.bf16.msra.mxu1 %v848_v50 }
  0x30   :  { %748 = vmatprep.subr.bf16.mxu0 %v849_v51  ;;  %770 = vmatprep.subr.bf16.mxu1 %v850_v52 }
  0x33   :  { %749 = vmatpush3.bf16.msra.mxu0 %v851_v53  ;;  %771 = vmatpush3.bf16.msra.mxu1 %v852_v54 }
  0x34   :  { %750 = vmatprep.subr.bf16.mxu0 %v853_v55  ;;  %772 = vmatprep.subr.bf16.mxu1 %v854_v56 }
  0x37   :  { %751 = vmatpush3.bf16.msra.mxu0 %v855_v57  ;;  %773 = vmatpush3.bf16.msra.mxu1 %v856_v58 }
  0x38   :  { %752 = vmatprep.subr.bf16.mxu0 %v857_v59  ;;  %774 = vmatprep.subr.bf16.mxu1 %v858_v60 }
  0x3b   :  { %753 = vmatpush3.bf16.msra.mxu0 %v859_v61  ;;  %775 = vmatpush3.bf16.msra.mxu1 %v860_v62 }
  0x3c   :  { %754 = vmatprep.subr.bf16.mxu0 %v861_v63  ;;  %776 = vmatprep.subr.bf16.mxu1 %v862_v0 }
  0x3f   :  { %755 = vmatpush3.bf16.msra.mxu0 %v863_v1  ;;  %777 = vmatpush3.bf16.msra.mxu1 %v864_v2 }
  0xf5   :  { %v271_v14 = vpop.f32.mrb[0].mxu0  ;;  %v312_v15 = vpop.f32.mrb[0].mxu1 }
  0xf6   :  { %v272_v16 = vadd.f32 %v271_v14, %v60_v10  ;;  %v313_v17 = vadd.f32 %v312_v15, %v68_v11  ;;  %v273_v18 = vpop.f32.mrb[1].mxu0  ;;  %v314_v19 = vpop.f32.mrb[1].mxu1 }
  0xf7   :  { %v274_v20 = vadd.f32 %v273_v18, %v64_v12  ;;  %v315_v21 = vadd.f32 %v314_v19, %v72_v13  ;;  %v275_v22 = vpop.f32.mrb[2].mxu0  ;;  %v316_v23 = vpop.f32.mrb[2].mxu1 }
  0xf8   :  { %v319_v24 = vmax.f32 %v272_v16, 0.0  ;;  %v321_v25 = vmax.f32 %v313_v17, 0.0  ;;  %v276_v26 = vpop.f32.mrb[3].mxu0  ;;  %v317_v27 = vpop.f32.mrb[3].mxu1 }
  0xf9   :  { %v320_v28 = vmax.f32 %v274_v20, 0.0  ;;  %v322_v29 = vmax.f32 %v315_v21, 0.0 }
  0xfa   :  { %v325_v30 = vpack.c.bf16 %v321_v25, %v321_v25  ;;  %v323_v33 = vpack.c.bf16 %v319_v24, %v319_v24 }
  0xfb   :  { %v324_v31 = vpack.c.bf16 %v320_v28, %v320_v28  ;;  %v326_v32 = vpack.c.bf16 %v322_v29, %v322_v29 }
  0xfd   :  { %622 = vmatprep.mubr.bf16.mxu0 %v324_v31  ;;  %662 = vmatprep.mubr.bf16.mxu1 %v326_v32 }
  0xfe   :  { %623 = vmatmul.mubr.bf16.vlgmr.msra.gmra.mrb[4].mxu0 %v323_v33  ;;  %663 = vmatmul.mubr.bf16.vlgmr.msra.gmra.mrb[4].mxu1 %v325_v30 }
 0x1d1   :  { %v756_v34 = vpop.f32.mrb[4].mxu0  ;;  %v778_v35 = vpop.f32.mrb[4].mxu1 }
 0x1d2   :  { %v757_v37 = vpop.f32.mrb[5].mxu0  ;;  %v779_v38 = vpop.f32.mrb[5].mxu1 }
 0x1d3   :  { %v758_v39 = vadd.f32 %v757_v37, %v756_v34  ;;  %v780_v40 = vadd.f32 %v779_v38, %v778_v35  ;;  %v759_v41 = vpop.f32.mrb[6].mxu0  ;;  %v781_v42 = vpop.f32.mrb[6].mxu1 }
 0x1d4   :  { %v760_v43 = vpop.f32.mrb[7].mxu0  ;;  %v782_v44 = vpop.f32.mrb[7].mxu1 }
 0x1d5   :  { %v625_v45 = vadd.f32 %v758_v39, %v707_v36 }
 0x1d7   :  { %v665_v46 = vadd.f32 %v780_v40, %v625_v45 }
 0x1d9   :  { %670 = vst [vmem:[%s1105_s5] sm:$0xff] %v665_v46 }

</bundles_post_ra>
